<compile_context>
chip_gen: v7x
topology: tpu7x:2x2x1
jax: 0.10.0
libtpu: 0.0.40
codegen_flags: <defaults>
</compile_context>

<pallas_src>
import jax
import jax.numpy as jnp
from jax import lax
from jax.experimental import pallas as pl
from jax.experimental.pallas import tpu as pltpu


def _flow_chain_kernel(x_ref, w_ref, b_ref, y_ref, ld_ref):
    """Runs the whole Sequential chain on one batch tile.

    x_ref  : (TB, D)        input activations (D = 2H)
    w_ref  : (L, H, 2H)     packed [Ws | Wt] per layer (resident in VMEM)
    b_ref  : (L, 1, 2H)     packed [bs | bt] per layer (resident in VMEM)
    y_ref  : (TB, D)        output activations
    ld_ref : (1, 1, TB)     accumulated log|det J| per sample (lane-dense)
    """
    L, H, _ = w_ref.shape
    x = x_ref[...].astype(jnp.float32)
    TB = x.shape[0]

    # Split once; halves are carried as separate values (no per-layer concat).
    h0 = x[:, :H]
    h1 = x[:, H:]

    # Accumulate s over layers as a full (TB, H) tile (cheap VPU adds); the
    # per-sample reduction is done once at the end via the MXU.
    s_sum = jnp.zeros((TB, H), dtype=jnp.float32)

    # Static Python loop over layers: unrolled at trace time (L is small).
    for l in range(L):
        if l % 2 == 0:
            cond, trans = h0, h1          # condition on first half
        else:
            cond, trans = h1, h0          # condition on second half

        # Fused scale/shift matmul on the MXU (one dot per layer).
        st = jnp.dot(cond.astype(w_ref.dtype), w_ref[l],
                     preferred_element_type=jnp.float32)
        st = st + b_ref[l].astype(jnp.float32)
        s = jnp.tanh(st[:, :H])           # EUP
        t = st[:, H:]

        new_trans = trans * jnp.exp(s) + t  # EUP exp + VPU fma
        s_sum = s_sum + s

        if l % 2 == 0:
            h1 = new_trans
        else:
            h0 = new_trans

    y_ref[...] = jnp.concatenate([h0, h1], axis=-1).astype(y_ref.dtype)

    # Lane-dense per-sample logDetJ: ones(1,H) contracted with s_sum(TB,H) on H
    # gives (1, TB) with the batch on the lane axis (MXU handles the transpose,
    # no sublane->lane relayout needed).
    ld_row = lax.dot_general(
        jnp.ones((1, H), jnp.float32), s_sum,
        dimension_numbers=(((1,), (1,)), ((), ())),
        preferred_element_type=jnp.float32)
    ld_ref[...] = ld_row[None]            # (1, 1, TB)


def _round_up(a, m):
    return (a + m - 1) // m * m


def sequential_flow(x, ws, bs, wt, bt, *, block_batch=256, param_dtype=None):
    """Pallas wrapper.

    x  : (B, D)      activations
    ws : (L, H, H)   scale-net weights,  bs : (L, 1, H) biases
    wt : (L, H, H)   shift-net weights,  bt : (L, 1, H) biases
    param_dtype : optionally jnp.bfloat16 to halve weight DMA / VMEM (keeps
                  f32 accumulation + f32 elementwise); default keeps f32.
    Returns (y (B, D), logDetJ (B, 1)).
    """
    B, D = x.shape
    L, H, _ = ws.shape
    assert D == 2 * H

    # Pack [Ws|Wt] along the output/lane axis -> one MXU dot per layer.
    w = jnp.concatenate([ws, wt], axis=-1)          # (L, H, 2H)
    b = jnp.concatenate([bs, bt], axis=-1)          # (L, 1, 2H)
    if param_dtype is not None:
        w = w.astype(param_dtype)
        b = b.astype(param_dtype)

    # Batch tiling: TB a multiple of 8 (f32 sublanes); pad B up to a multiple.
    TB = min(block_batch, _round_up(B, 8))
    TB = _round_up(TB, 8)
    B_pad = _round_up(B, TB)
    num_tiles = B_pad // TB
    if B_pad != B:
        x_in = jnp.zeros((B_pad, D), x.dtype).at[:B].set(x)
    else:
        x_in = x

    out_shapes = (
        jax.ShapeDtypeStruct((B_pad, D), x.dtype),              # transformed x
        jax.ShapeDtypeStruct((num_tiles, 1, TB), jnp.float32),  # lane-dense logDetJ
    )

    grid_spec = pltpu.PrefetchScalarGridSpec(
        num_scalar_prefetch=0,
        grid=(num_tiles,),
        in_specs=[
            pl.BlockSpec((TB, D), lambda i: (i, 0)),            # batch tile
            pl.BlockSpec((L, H, 2 * H), lambda i: (0, 0, 0)),   # weights resident
            pl.BlockSpec((L, 1, 2 * H), lambda i: (0, 0, 0)),   # biases resident
        ],
        out_specs=[
            pl.BlockSpec((TB, D), lambda i: (i, 0)),
            pl.BlockSpec((1, 1, TB), lambda i: (i, 0, 0)),
        ],
    )

    # Advisory cost estimate for XLA's scheduler.
    flops = 2 * B_pad * L * H * (2 * H) + 8 * B_pad * L * H
    transcendentals = 2 * B_pad * L * H
    bytes_accessed = (x_in.nbytes                       # read x
                      + x_in.nbytes + 4 * B_pad         # write y, logdet
                      + w.nbytes + b.nbytes)            # params (DMA'd once)
    cost = pl.CostEstimate(flops=int(flops),
                           transcendentals=int(transcendentals),
                           bytes_accessed=int(bytes_accessed))

    # Explicit scoped-VMEM budget: resident params + double-buffered tiles +
    # slack; clamped so it stays safe on v7x (64 MiB physical) as well.
    act_tile_bytes = TB * D * 4
    vmem_needed = w.nbytes + b.nbytes + 8 * act_tile_bytes + (1 << 20)
    vmem_limit = int(min(max(vmem_needed, 32 * 1024 * 1024), 64 * 1024 * 1024))

    y_p, ld_p = pl.pallas_call(
        _flow_chain_kernel,
        out_shape=out_shapes,
        grid_spec=grid_spec,
        compiler_params=pltpu.CompilerParams(
            dimension_semantics=("parallel",),      # batch tiles are independent
            vmem_limit_bytes=vmem_limit,
        ),
        cost_estimate=cost,
    )(x_in, w, b)

    y = y_p[:B]
    logdet = ld_p.reshape(B_pad)[:B].reshape(B, 1)
    return y, logdet


def _reference(x, ws, bs, wt, bt):
    """Pure-JAX reference of the same Sequential forward, for verification."""
    x = x.astype(jnp.float32)
    B, D = x.shape
    L, H, _ = ws.shape
    logdet = jnp.zeros((B, 1), jnp.float32)
    for l in range(L):
        x1, x2 = x[:, :H], x[:, H:]
        if l % 2 == 1:
            x1, x2 = x2, x1
        s = jnp.tanh(x1 @ ws[l] + bs[l])
        t = x1 @ wt[l] + bt[l]
        y2 = x2 * jnp.exp(s) + t
        logdet = logdet + jnp.sum(s, axis=-1, keepdims=True)
        x = jnp.concatenate([y2, x1], -1) if l % 2 == 1 else jnp.concatenate([x1, y2], -1)
    return x, logdet


if __name__ == "__main__":
    B, D, L = 4, 32, 3
    H = D // 2

    key = jax.random.PRNGKey(0)
    kx, kws, kbs, kwt, kbt = jax.random.split(key, 5)

    x = jax.random.normal(kx, (B, D), dtype=jnp.float32)
    # Deterministic, small-scale parameter init (synthetic; no checkpoint load).
    ws = 0.1 * jax.random.normal(kws, (L, H, H), dtype=jnp.float32)
    bs = 0.05 * jax.random.normal(kbs, (L, 1, H), dtype=jnp.float32)
    wt = 0.1 * jax.random.normal(kwt, (L, H, H), dtype=jnp.float32)
    bt = 0.05 * jax.random.normal(kbt, (L, 1, H), dtype=jnp.float32)

    y, logdet = sequential_flow(x, ws, bs, wt, bt)
    jax.block_until_ready((y, logdet))

    y_ref, ld_ref = _reference(x, ws, bs, wt, bt)
    assert y.shape == (B, D) and logdet.shape == (B, 1)
    assert jnp.allclose(y, y_ref, atol=1e-4, rtol=1e-4)
    assert jnp.allclose(logdet, ld_ref, atol=1e-4, rtol=1e-4)

    print("KERNEL_OK")
</pallas_src>

<mosaic_0001>
module attributes {stable_mosaic.version = 11 : i64} {
  func.func @_flow_chain_kernel(%arg0: i32, %arg1: memref<8x32xf32, #tpu.memory_space<vmem>>, %arg2: memref<3x16x32xf32, #tpu.memory_space<vmem>>, %arg3: memref<3x1x32xf32, #tpu.memory_space<vmem>>, %arg4: memref<8x32xf32, #tpu.memory_space<vmem>>, %arg5: memref<1x1x8xf32, #tpu.memory_space<vmem>>) attributes {dimension_semantics = [#tpu.dimension_semantics<parallel>], iteration_bounds = array<i64: 1>, scalar_prefetch = 0 : i64, scratch_operands = 0 : i64, tpu.core_type = #tpu.core_type<tc>, window_params = [{transform_indices = @transform_0, window_bounds = array<i64: 8, 32>}, {pipeline_mode = #tpu.pipeline_mode<synchronous>, transform_indices = @transform_1, window_bounds = array<i64: 3, 16, 32>}, {pipeline_mode = #tpu.pipeline_mode<synchronous>, transform_indices = @transform_2, window_bounds = array<i64: 3, 1, 32>}, {transform_indices = @transform_3, window_bounds = array<i64: 8, 32>}, {transform_indices = @transform_4, window_bounds = array<i64: 1, 1, 8>}]} {
    %c0 = arith.constant 0 : index
    %c0_0 = arith.constant 0 : index
    %0 = vector.load %arg1[%c0, %c0_0] : memref<8x32xf32, #tpu.memory_space<vmem>>, vector<8x32xf32>
    %1 = vector.extract_strided_slice %0 {offsets = [0, 0], sizes = [8, 16], strides = [1, 1]} : vector<8x32xf32> to vector<8x16xf32>
    %2 = vector.extract_strided_slice %0 {offsets = [0, 16], sizes = [8, 16], strides = [1, 1]} : vector<8x32xf32> to vector<8x16xf32>
    %cst = arith.constant 0.000000e+00 : f32
    %3 = vector.broadcast %cst : f32 to vector<8x16xf32>
    %c0_1 = arith.constant 0 : index
    %c0_2 = arith.constant 0 : index
    %c0_3 = arith.constant 0 : index
    %4 = vector.load %arg2[%c0_1, %c0_2, %c0_3] : memref<3x16x32xf32, #tpu.memory_space<vmem>>, vector<1x16x32xf32>
    %5 = vector.shape_cast %4 : vector<1x16x32xf32> to vector<16x32xf32>
    %cst_4 = arith.constant dense<0.000000e+00> : vector<8x32xf32>
    %6 = tpu.matmul %1, %5, %cst_4 {dimension_numbers = #tpu.dot_dimension_numbers<[1], [0], [0], [1], [0, 0, 1, 1], [], []>} : vector<8x16xf32>, vector<16x32xf32>, vector<8x32xf32> -> vector<8x32xf32>
    %c0_5 = arith.constant 0 : index
    %c0_6 = arith.constant 0 : index
    %c0_7 = arith.constant 0 : index
    %7 = vector.load %arg3[%c0_5, %c0_6, %c0_7] : memref<3x1x32xf32, #tpu.memory_space<vmem>>, vector<1x1x32xf32>
    %8 = vector.shape_cast %7 : vector<1x1x32xf32> to vector<1x32xf32>
    %9 = vector.broadcast %8 : vector<1x32xf32> to vector<8x32xf32>
    %10 = arith.addf %6, %9 : vector<8x32xf32>
    %11 = vector.extract_strided_slice %10 {offsets = [0, 0], sizes = [8, 16], strides = [1, 1]} : vector<8x32xf32> to vector<8x16xf32>
    %12 = math.tanh %11 : vector<8x16xf32>
    %13 = vector.extract_strided_slice %10 {offsets = [0, 16], sizes = [8, 16], strides = [1, 1]} : vector<8x32xf32> to vector<8x16xf32>
    %14 = math.exp %12 : vector<8x16xf32>
    %15 = arith.mulf %2, %14 : vector<8x16xf32>
    %16 = arith.addf %15, %13 : vector<8x16xf32>
    %17 = arith.addf %3, %12 : vector<8x16xf32>
    %c1 = arith.constant 1 : index
    %c0_8 = arith.constant 0 : index
    %c0_9 = arith.constant 0 : index
    %18 = vector.load %arg2[%c1, %c0_8, %c0_9] : memref<3x16x32xf32, #tpu.memory_space<vmem>>, vector<1x16x32xf32>
    %19 = vector.shape_cast %18 : vector<1x16x32xf32> to vector<16x32xf32>
    %cst_10 = arith.constant dense<0.000000e+00> : vector<8x32xf32>
    %20 = tpu.matmul %16, %19, %cst_10 {dimension_numbers = #tpu.dot_dimension_numbers<[1], [0], [0], [1], [0, 0, 1, 1], [], []>} : vector<8x16xf32>, vector<16x32xf32>, vector<8x32xf32> -> vector<8x32xf32>
    %c1_11 = arith.constant 1 : index
    %c0_12 = arith.constant 0 : index
    %c0_13 = arith.constant 0 : index
    %21 = vector.load %arg3[%c1_11, %c0_12, %c0_13] : memref<3x1x32xf32, #tpu.memory_space<vmem>>, vector<1x1x32xf32>
    %22 = vector.shape_cast %21 : vector<1x1x32xf32> to vector<1x32xf32>
    %23 = vector.broadcast %22 : vector<1x32xf32> to vector<8x32xf32>
    %24 = arith.addf %20, %23 : vector<8x32xf32>
    %25 = vector.extract_strided_slice %24 {offsets = [0, 0], sizes = [8, 16], strides = [1, 1]} : vector<8x32xf32> to vector<8x16xf32>
    %26 = math.tanh %25 : vector<8x16xf32>
    %27 = vector.extract_strided_slice %24 {offsets = [0, 16], sizes = [8, 16], strides = [1, 1]} : vector<8x32xf32> to vector<8x16xf32>
    %28 = math.exp %26 : vector<8x16xf32>
    %29 = arith.mulf %1, %28 : vector<8x16xf32>
    %30 = arith.addf %29, %27 : vector<8x16xf32>
    %31 = arith.addf %17, %26 : vector<8x16xf32>
    %c2 = arith.constant 2 : index
    %c0_14 = arith.constant 0 : index
    %c0_15 = arith.constant 0 : index
    %32 = vector.load %arg2[%c2, %c0_14, %c0_15] : memref<3x16x32xf32, #tpu.memory_space<vmem>>, vector<1x16x32xf32>
    %33 = vector.shape_cast %32 : vector<1x16x32xf32> to vector<16x32xf32>
    %cst_16 = arith.constant dense<0.000000e+00> : vector<8x32xf32>
    %34 = tpu.matmul %30, %33, %cst_16 {dimension_numbers = #tpu.dot_dimension_numbers<[1], [0], [0], [1], [0, 0, 1, 1], [], []>} : vector<8x16xf32>, vector<16x32xf32>, vector<8x32xf32> -> vector<8x32xf32>
    %c2_17 = arith.constant 2 : index
    %c0_18 = arith.constant 0 : index
    %c0_19 = arith.constant 0 : index
    %35 = vector.load %arg3[%c2_17, %c0_18, %c0_19] : memref<3x1x32xf32, #tpu.memory_space<vmem>>, vector<1x1x32xf32>
    %36 = vector.shape_cast %35 : vector<1x1x32xf32> to vector<1x32xf32>
    %37 = vector.broadcast %36 : vector<1x32xf32> to vector<8x32xf32>
    %38 = arith.addf %34, %37 : vector<8x32xf32>
    %39 = vector.extract_strided_slice %38 {offsets = [0, 0], sizes = [8, 16], strides = [1, 1]} : vector<8x32xf32> to vector<8x16xf32>
    %40 = math.tanh %39 : vector<8x16xf32>
    %41 = vector.extract_strided_slice %38 {offsets = [0, 16], sizes = [8, 16], strides = [1, 1]} : vector<8x32xf32> to vector<8x16xf32>
    %42 = math.exp %40 : vector<8x16xf32>
    %43 = arith.mulf %16, %42 : vector<8x16xf32>
    %44 = arith.addf %43, %41 : vector<8x16xf32>
    %45 = arith.addf %31, %40 : vector<8x16xf32>
    %46 = tpu.concatenate %30, %44 in 1 : vector<8x16xf32>, vector<8x16xf32> -> vector<8x32xf32>
    %c0_20 = arith.constant 0 : index
    %c0_21 = arith.constant 0 : index
    %47 = vector.load %arg4[%c0_20, %c0_21] : memref<8x32xf32, #tpu.memory_space<vmem>>, vector<8x32xf32>
    tpu.vector_store %arg4[%c0_20, %c0_21], %46 {strides = array<i32>} : memref<8x32xf32, #tpu.memory_space<vmem>>, vector<8x32xf32>,
    %cst_22 = arith.constant 1.000000e+00 : f32
    %48 = vector.broadcast %cst_22 : f32 to vector<1x16xf32>
    %cst_23 = arith.constant dense<0.000000e+00> : vector<1x8xf32>
    %49 = tpu.matmul %48, %45, %cst_23 {dimension_numbers = #tpu.dot_dimension_numbers<[1], [1], [0], [0], [0, 0, 1, 0], [], []>} : vector<1x16xf32>, vector<8x16xf32>, vector<1x8xf32> -> vector<1x8xf32>
    %50 = vector.shape_cast %49 : vector<1x8xf32> to vector<1x1x8xf32>
    %c0_24 = arith.constant 0 : index
    %c0_25 = arith.constant 0 : index
    %c0_26 = arith.constant 0 : index
    %51 = vector.load %arg5[%c0_24, %c0_25, %c0_26] : memref<1x1x8xf32, #tpu.memory_space<vmem>>, vector<1x1x8xf32>
    tpu.vector_store %arg5[%c0_24, %c0_25, %c0_26], %50 {strides = array<i32>} : memref<1x1x8xf32, #tpu.memory_space<vmem>>, vector<1x1x8xf32>,
    return
  }
  func.func @transform_0(%arg0: i32) -> (i32, i32) {
    %c0_i32 = arith.constant 0 : i32
    %c0_i32_0 = arith.constant 0 : i32
    return %arg0, %c0_i32 : i32, i32
  }
  func.func @transform_1(%arg0: i32) -> (i32, i32, i32) {
    %c0_i32 = arith.constant 0 : i32
    %c0_i32_0 = arith.constant 0 : i32
    %c0_i32_1 = arith.constant 0 : i32
    %c0_i32_2 = arith.constant 0 : i32
    return %c0_i32, %c0_i32_0, %c0_i32_1 : i32, i32, i32
  }
  func.func @transform_2(%arg0: i32) -> (i32, i32, i32) {
    %c0_i32 = arith.constant 0 : i32
    %c0_i32_0 = arith.constant 0 : i32
    %c0_i32_1 = arith.constant 0 : i32
    %c0_i32_2 = arith.constant 0 : i32
    return %c0_i32, %c0_i32_0, %c0_i32_1 : i32, i32, i32
  }
  func.func @transform_3(%arg0: i32) -> (i32, i32) {
    %c0_i32 = arith.constant 0 : i32
    %c0_i32_0 = arith.constant 0 : i32
    return %arg0, %c0_i32 : i32, i32
  }
  func.func @transform_4(%arg0: i32) -> (i32, i32, i32) {
    %c0_i32 = arith.constant 0 : i32
    %c0_i32_0 = arith.constant 0 : i32
    %c0_i32_1 = arith.constant 0 : i32
    return %arg0, %c0_i32, %c0_i32_0 : i32, i32, i32
  }
}

</mosaic_0001>

<bundles_post_ra>
// kernel: tpu_custom_call.1
= control target key start
LH: loop header
LB: loop body
LE: loop exit
PB: predicated region body
PF: predicated region fallthrough
CT: control target
= control target key end

     0   :  { %10 = vsyncpa [#allocation3], 0  ;;  %s728_s0 = inlined_call_operand.hbm [shape: f32[8,32], index: 0, kind: input, shape index: {}]   ;;  %s729_s1 = inlined_call_operand.hbm [shape: f32[3,16,32], index: 1, kind: input, shape index: {}]   ;;  %s730_s2 = inlined_call_operand.vmem [shape: f32[3,1,32], index: 2, kind: input, shape index: {}]   ;;  %s731_s3 = inlined_call_operand.hbm [shape: f32[8,32], index: 3, kind: output, shape index: {0}]   ;;  %s732_s4 = inlined_call_operand.hbm [shape: f32[1,1,8], index: 4, kind: output, shape index: {1}]  }
   0x1   :  { %11 = vsyncpa [#allocation6], 0 }
   0x2   :  { %12 = vsyncpa [#allocation4], 0 }
   0x3   :  { %13 = vsyncpa [#allocation9], 0  ;;  %s615_s15 = smov [#allocation2]   ;;  %s616_s17 = smov [#allocation5]  }
   0x4   :  { %s20_s16 = sshll.u32 %s615_s15, 4  ;;  %s29_s18 = sshll.u32 %s616_s17, 4  ;;  %s21_s16 = int_to_ptr.vmem [resolvable:$true] %s20_s16  ;;  %s652_s18 = int_to_ptr.vmem [resolvable:$true] %s29_s18 }
   0x5   :  { %s519_s21 = scalar_lea.hbm %s728_s0, 128 }
   0x6   :  { %p520_p0 = scmp.ne.s32.totalorder %s728_s0, %s519_s21  ;;  %p523_p1 = scmp.lt.u32.totalorder %s519_s21, %s728_s0 }
   0x8   :  { %p525_p2 = pnand %p523_p1, %p520_p0 }
   0xa   :  { %528 = shalt.err (!%p525_p2)
}
   0xb   :  { %s529_s26 = scalar_lea.vmem %s21_s16, 128  ;;  %p534_p4 = scmp.lt.s32.totalorder %s21_s16, %s21_s16 }
   0xc   :  { %p530_p3 = scmp.ne.s32.totalorder %s21_s16, %s529_s26  ;;  %p535_p5 = scmp.lt.s32.totalorder %s529_s26, %s529_s26 }
   0xe   :  { %p536_p6 = por %p535_p5, %p534_p4 }
  0x10   :  { %p537_p7 = pnand %p536_p6, %p530_p3 }
  0x12   :  { %540 = shalt.err (!%p537_p7)
}
  0x13   :  { %23 = dma.hbm_to_vmem [thread:$0]  %s728_s0, 128, %s21_s16, [#allocation3]  }
  0x14   :  { %s541_s5 = scalar_lea.hbm %s729_s1, 768 }
  0x15   :  { %p542_p8 = scmp.ne.s32.totalorder %s729_s1, %s541_s5  ;;  %p545_p9 = scmp.lt.u32.totalorder %s541_s5, %s729_s1 }
  0x17   :  { %p547_p10 = pnand %p545_p9, %p542_p8 }
  0x19   :  { %550 = shalt.err (!%p547_p10)
}
  0x1a   :  { %s551_s10 = scalar_lea.vmem %s652_s18, 768  ;;  %p556_p12 = scmp.lt.s32.totalorder %s652_s18, %s652_s18 }
  0x1b   :  { %p552_p11 = scmp.ne.s32.totalorder %s652_s18, %s551_s10  ;;  %p557_p13 = scmp.lt.s32.totalorder %s551_s10, %s551_s10 }
  0x1d   :  { %p558_p0 = por %p557_p13, %p556_p12 }
  0x1f   :  { %p559_p1 = pnand %p558_p0, %p552_p11 }
  0x21   :  { %562 = shalt.err (!%p559_p1)
}
  0x22   :  { %s617_s0 = smov 128   ;;  %s618_s11 = smov 8  }
  0x23   :  { %35 = dma.hbm_to_vmem [thread:$0]  %s729_s1, 768, %s652_s18, [#allocation6], %s617_s0, %s617_s0, %s618_s11  }
  0x24   :  { %607 = dma.done.wait [#allocation3], 128  }
  0x25   :  { %608 = vsyncadd [#allocation3], 4294967168 }
  0x26   :  { %609 = dma.done.wait [#allocation6], 768  }
  0x27   :  { %610 = vsyncadd [#allocation6], 4294966528  ;;  %v619_v0 = vmov 0.0|0.0   ;;  %vm620_vm0 = vmmov 0   ;;  %v621_v1 = vmov 0.0   ;;  %v45_v2 = vld [vmem:[#allocation5] sm:$0xff] }
  0x28   :  { %486 = vmatprep.subr.bf16.mxu0 %v619_v0  ;;  %464 = vmatprep.mubr.msk.f32.mxu0 %vm620_vm0, %v621_v1  ;;  %v46_v3 = vld [vmem:[#allocation5 + $0x8] sm:$0xff]  ;;  %v44_v5 = vld [vmem:[#allocation2] sm:$0xff]  ;;  %vm54_vm1 = vcmask 130048   ;;  %v139_v12 = vld [vmem:[#allocation5 + $0x10] sm:$0xff]  ;;  %s622_s15 = smov 16   ;;  %s623_s16 = smov 112  }
  0x29   :  { %489 = vmatprep.subr.bf16.mxu1 %v619_v0  ;;  %471 = vmatprep.mubr.msk.f32.mxu1 %vm620_vm0, %v621_v1  ;;  %v487_v4 = vpack.c.bf16 %v46_v3, %v45_v2  ;;  %v439_v6 = vld [vmem:[%s730_s2] ss:$0 sm:$0xff]  ;;  %v235_v20 = vld [vmem:[#allocation5 + $0x20] sm:$0xff]  ;;  %v236_v21 = vld [vmem:[#allocation5 + $0x28] sm:$0xff]  ;;  %v624_v41 = vmov 1.0   ;;  %vm329_vm2 = vcmask 261120  }
  0x2a   :  { %v140_v13 = vld [vmem:[#allocation5 + $0x18] sm:$0xff]  ;;  %v493_v22 = vpack.c.bf16 %v236_v21, %v235_v20 }
  0x2b   :  { %488 = vmatpush3.bf16.msra.mxu0 %v487_v4  ;;  %v490_v14 = vpack.c.bf16 %v140_v13, %v139_v12  ;;  %v442_v23 = vld [vmem:[%s730_s2 + $0x1] ss:$0 sm:$0xff]  ;;  %v445_v33 = vld [vmem:[%s730_s2 + $0x2] ss:$0 sm:$0xff]  ;;  %s625_s2 = smov [#allocation7]  }
  0x2c   :  { %492 = vmatprep.subr.bf16.mxu0 %v619_v0  ;;  %s415_s21 = sshll.u32 %s625_s2, 4  ;;  %s416_s21 = int_to_ptr.vmem [resolvable:$true] %s415_s21 }
  0x2d   :  { %491 = vmatpush3.bf16.msra.mxu1 %v490_v14  ;;  %s563_s22 = scalar_lea.vmem %s416_s21, 128  ;;  %p568_p3 = scmp.lt.s32.totalorder %s416_s21, %s416_s21 }
  0x2e   :  { %465 = vmatmul.mubr.msk.f32.vlgmr.msra.gmra.mrb[0].mxu0 %vm54_vm1, %v44_v5  ;;  %481 = vmatprep.subr.mxu1 %v621_v1  ;;  %p564_p2 = scmp.ne.s32.totalorder %s416_s21, %s563_s22  ;;  %p569_p4 = scmp.lt.s32.totalorder %s563_s22, %s563_s22 }
  0x2f   :  { %478 = vmatprep.mubr.msk.f32.mxu0 %vm620_vm0, %v621_v1  ;;  %494 = vmatpush3.bf16.msra.mxu0 %v493_v22 }
  0x30   :  { %p570_p5 = por %p569_p4, %p568_p3 }
  0x32   :  { %p571_p6 = pnand %p570_p5, %p564_p2 }
 0x101   :  { %v124_v7 = vpop.f32.mrb[0].mxu0 }
 0x102   :  { %v125_v8 = vadd.f32 %v439_v6, %v124_v7  ;;  %v466_v9 = vpop.f32.mrb[1].mxu0 }
 0x104   :  { %507 = vtanh.f32 %v125_v8 }
 0x10e   :  { %v508_v10 = vpop.eup %507 }
 0x10f   :  { %v129_v11 = vmul.f32 1.442695, %v508_v10 }
 0x111   :  { %509 = vpow2.f32 %v129_v11 }
 0x11b   :  { %v510_v15 = vpop.eup %509 }
 0x11c   :  { %132 = vrot.lane.b32.xlu0 %v510_v15, %s622_s15 }
 0x18e   :  { %v133_v16 = vpop.permute.xlu0 %132 }
 0x18f   :  { %v135_v17 = vmul.f32 %v133_v16, %v44_v5 }
 0x191   :  { %v136_v18 = vadd.f32 %v135_v17, %v125_v8 }
 0x193   :  { %150 = vrot.lane.b32.xlu0 %v136_v18, %s623_s16 }
 0x205   :  { %v151_v19 = vpop.permute.xlu0 %150 }
 0x206   :  { %472 = vmatmul.mubr.msk.f32.vlgmr.msra.gmra.mrb[0].mxu1 %vm54_vm1, %v151_v19 }
 0x207   :  { %483 = vmatprep.mubr.msk.f32.mxu1 %vm620_vm0, %v621_v1 }
 0x2d9   :  { %v220_v24 = vpop.f32.mrb[0].mxu1 }
 0x2da   :  { %v221_v25 = vadd.f32 %v442_v23, %v220_v24  ;;  %v473_v26 = vpop.f32.mrb[1].mxu1 }
 0x2dc   :  { %229 = vrot.lane.b32.xlu1 %v221_v25, %s623_s16  ;;  %511 = vtanh.f32 %v221_v25 }
 0x2e6   :  { %v512_v27 = vpop.eup %511 }
 0x2e7   :  { %v225_v28 = vmul.f32 1.442695, %v512_v27  ;;  %v233_v37 = vadd.f32 %v512_v27, %v508_v10 }
 0x2e9   :  { %513 = vpow2.f32 %v225_v28 }
 0x2f3   :  { %v514_v29 = vpop.eup %513 }
 0x2f4   :  { %v227_v30 = vmul.f32 %v514_v29, %v44_v5 }
 0x34e   :  { %v230_v31 = vpop.permute.xlu1 %229 }
 0x34f   :  { %v232_v32 = vadd.f32 %v230_v31, %v227_v30 }
 0x351   :  { %479 = vmatmul.mubr.msk.f32.vlgmr.msra.gmra.mrb[2].mxu0 %vm54_vm1, %v232_v32 }
 0x424   :  { %v314_v34 = vpop.f32.mrb[2].mxu0 }
 0x425   :  { %v315_v35 = vadd.f32 %v445_v33, %v314_v34  ;;  %v480_v36 = vpop.f32.mrb[3].mxu0 }
 0x427   :  { %515 = vtanh.f32 %v315_v35 }
 0x431   :  { %v516_v38 = vpop.eup %515 }
 0x432   :  { %v319_v39 = vmul.f32 1.442695, %v516_v38  ;;  %v327_v40 = vadd.f32 %v516_v38, %v233_v37 }
 0x434   :  { %517 = vpow2.f32 %v319_v39  ;;  %482 = vmatpush3.xpose.msk.msra.mxu1 %vm54_vm1, %v327_v40 }
 0x437   :  { %484 = vmatmul.mubr.msk.f32.vlgmr.msra.gmra.mrb[2].mxu1 %vm54_vm1, %v624_v41 }
 0x43e   :  { %v518_v42 = vpop.eup %517 }
 0x43f   :  { %322 = vrot.lane.b32.xlu1 %v518_v42, %s622_s15 }
 0x4b1   :  { %v323_v43 = vpop.permute.xlu1 %322 }
 0x4b2   :  { %v325_v44 = vmul.f32 %v323_v43, %v136_v18 }
 0x4b4   :  { %v326_v45 = vadd.f32 %v325_v44, %v315_v35 }
 0x4b6   :  { %v328_v46 = vsel %vm54_vm1, %v232_v32, %v326_v45 }
 0x4b7   :  { %330 = vst.msk [vmem:[#allocation7] sm:$0xff] %vm329_vm2, %v328_v46 }
 0x4b8   :  { %574 = shalt.err (!%p571_p6)
}
 0x4b9   :  { %s575_s25 = scalar_lea.hbm %s731_s3, 128 }
 0x4ba   :  { %p576_p7 = scmp.ne.s32.totalorder %s731_s3, %s575_s25  ;;  %p579_p8 = scmp.lt.u32.totalorder %s575_s25, %s731_s3 }
 0x4bc   :  { %p581_p9 = pnand %p579_p8, %p576_p7 }
 0x4be   :  { %584 = shalt.err (!%p581_p9)
}
 0x4bf   :  { %418 = dma.vmem_to_hbm [thread:$0]  %s416_s21, 128, %s731_s3, [#allocation4]   ;;  %vm407_vm3 = vcmask 57344  }
 0x4c0   :  { %s626_s6 = smov [#allocation8]  }
 0x4c1   :  { %s425_s7 = sshll.u32 %s626_s6, 4  ;;  %s426_s7 = int_to_ptr.vmem [resolvable:$true] %s425_s7 }
 0x4c2   :  { %s585_s8 = scalar_lea.vmem %s426_s7, 16  ;;  %s589_s9 = scalar_lea.vmem %s426_s7, 32 }
 0x4c3   :  { %p586_p10 = scmp.ne.s32.totalorder %s426_s7, %s585_s8  ;;  %p590_p11 = scmp.lt.s32.totalorder %s426_s7, %s426_s7 }
 0x4c4   :  { %p591_p12 = scmp.lt.s32.totalorder %s589_s9, %s585_s8 }
 0x4c6   :  { %p592_p13 = por %p591_p12, %p590_p11 }
 0x4c8   :  { %p593_p0 = pnand %p592_p13, %p586_p10 }
 0x50a   :  { %v403_v47 = vpop.f32.mrb[2].mxu1 }
 0x50b   :  { %v485_v48 = vpop.f32.mrb[3].mxu1  ;;  %408 = vst.msk [vmem:[#allocation8] sm:$0x1] %vm407_vm3, %v403_v47 }
 0x50c   :  { %596 = shalt.err (!%p593_p0)
}
 0x50d   :  { %s597_s11 = scalar_lea.hbm %s732_s4, 16 }
 0x50e   :  { %p598_p1 = scmp.ne.s32.totalorder %s732_s4, %s597_s11  ;;  %p601_p2 = scmp.lt.u32.totalorder %s597_s11, %s732_s4 }
 0x510   :  { %p603_p3 = pnand %p601_p2, %p598_p1 }
 0x512   :  { %606 = shalt.err (!%p603_p3)
}
 0x513   :  { %428 = dma.vmem_to_hbm [thread:$0]  %s426_s7, 16, %s732_s4, [#allocation9]  }
 0x514   :  { %611 = dma.done.wait [#allocation4], 128  }
 0x515   :  { %612 = vsyncadd [#allocation4], 4294967168 }
 0x516   :  { %613 = dma.done.wait [#allocation9], 16  }
 0x517   :  { %614 = vsyncadd [#allocation9], 4294967280 }
 0x518   :  { %435 = vsyncpa [#allocation3], 1 }
 0x519   :  { %436 = vsyncpa [#allocation6], 1 }
 0x51a   :  { %437 = vsyncpa [#allocation4], 1 }
 0x51b   :  { %438 = vsyncpa [#allocation9], 1 }

</bundles_post_ra>
